<compile_context>
chip_gen: v7x
topology: tpu7x:2x2x1
jax: 0.10.0
libtpu: 0.0.40
codegen_flags: <defaults>
</compile_context>

<pallas_src>
import functools

import jax
import jax.numpy as jnp
from jax.experimental import pallas as pl
from jax.experimental.pallas import tpu as pltpu


def _round_up(n, m):
    return ((n + m - 1) // m) * m


def _discriminator_kernel(x_ref, w1_ref, b1_ref, w2_ref, b2_ref, w3_ref, b3_ref, o_ref):
    """Fused MLP: Linear -> LeakyReLU(0.2) -> [Dropout] -> Linear -> LeakyReLU(0.2) -> Linear."""
    # x streams in f32; cast to bf16 on-chip (VPU) right before the MXU.
    x = x_ref[...].astype(jnp.bfloat16)  # (TILE_B, K1)

    # Linear(image_size, hidden_dim*2): bf16 MXU inputs, f32 accumulation.
    h1 = jnp.dot(x, w1_ref[...], preferred_element_type=jnp.float32) + b1_ref[...]
    # LeakyReLU(0.2): mul + max (one fewer VALU op than cmp+select).
    h1 = jnp.maximum(h1, 0.2 * h1)

    # TODO(synk): nn.Dropout(0.3) is treated as identity (eval-mode semantics);
    # PyTorch's training-mode RNG stream cannot be reproduced bit-exactly.

    # Linear(hidden_dim*2, hidden_dim).
    h2 = jnp.dot(h1.astype(jnp.bfloat16), w2_ref[...],
                 preferred_element_type=jnp.float32) + b2_ref[...]
    h2 = jnp.maximum(h2, 0.2 * h2)

    # Linear(hidden_dim, 1): N=1 output -> VPU multiply + lane reduction (XLU),
    # not an MXU pass.  w3 is a (1, N2p) row vector, b3 an SMEM scalar.
    out_col = jnp.sum(h2 * w3_ref[...], axis=-1, keepdims=True) + b3_ref[0, 0]  # (TILE_B, 1)

    # Lane-dense store: (TILE_B, 1) -> (1, TILE_B) is a small XLU move (slack
    # unit) and turns masked vst.msk partial stores into unmasked vst.
    o_ref[...] = jnp.transpose(out_col).astype(o_ref.dtype)


def prepare_params(params):
    """Pad feature dims to multiples of 128 and cast matmul weights to bf16.

    Call ONCE and reuse the result across forward calls (weights are resident
    in VMEM inside the kernel; repacking them per call would just burn HBM BW).
    Zero padding is numerically exact.
    """
    f32, bf16 = jnp.float32, jnp.bfloat16
    w1, b1 = params["w1"], params["b1"]
    w2, b2 = params["w2"], params["b2"]
    w3, b3 = params["w3"], params["b3"]

    K1, N1 = w1.shape
    N2 = w2.shape[1]
    N1p = _round_up(N1, 128)
    N2p = _round_up(N2, 128)

    w1p = jnp.zeros((K1, N1p), bf16).at[:, :N1].set(w1.astype(bf16))     # K dim NOT padded
    b1p = jnp.zeros((1, N1p), f32).at[:, :N1].set(b1.reshape(1, -1).astype(f32))
    w2p = jnp.zeros((N1p, N2p), bf16).at[:N1, :N2].set(w2.astype(bf16))
    b2p = jnp.zeros((1, N2p), f32).at[:, :N2].set(b2.reshape(1, -1).astype(f32))
    w3p = jnp.zeros((1, N2p), f32).at[0, :N2].set(w3.reshape(-1).astype(f32))  # row vector
    b3s = jnp.asarray(b3, f32).reshape(1, 1)                                    # SMEM scalar
    return {"w1": w1p, "b1": b1p, "w2": w2p, "b2": b2p, "w3": w3p, "b3": b3s}


def _pick_tile_b(B, tile_b):
    tile_b = max(8, int(tile_b))
    if B > tile_b:
        return _round_up(tile_b, 128)           # multi-tile: lane-dense output blocks
    if B >= 256:
        # >= 2 grid steps so dimension_semantics=("parallel",) can split the
        # batch across both v7x TensorCores.
        return _round_up(pl.cdiv(B, 2), 128)
    return _round_up(B, 8)                       # single small tile (sublane-dense)


def _vmem_footprint(tile_b, K1, N1p, N2p):
    resident = K1 * N1p * 2 + N1p * N2p * 2 + (N1p + 2 * N2p) * 4   # single-buffered weights
    x_buf = 2 * tile_b * K1 * 4                                      # double-buffered x tile
    out_buf = 2 * tile_b * 4                                          # double-buffered out row
    act = 2 * tile_b * (N1p + N2p) * 4                                # f32 h1/h2 + slack
    return resident + x_buf + out_buf + act


def _resident_spec(shape, single_buffer):
    if single_buffer:
        # Constant-index blocks never re-DMA; single-buffer them so they do not
        # take 2x VMEM (only the streamed x input needs double-buffering).
        return pl.BlockSpec(shape, lambda i: (0, 0), pipeline_mode=pl.Buffered(1))
    return pl.BlockSpec(shape, lambda i: (0, 0))


@functools.partial(jax.jit, static_argnames=("tile_b", "single_buffer_weights"))
def _forward_impl(x, prepared, *, tile_b, single_buffer_weights):
    w1p, b1p = prepared["w1"], prepared["b1"]
    w2p, b2p = prepared["w2"], prepared["b2"]
    w3p, b3s = prepared["w3"], prepared["b3"]

    B, K1 = x.shape
    assert w1p.shape[0] == K1, "x feature dim must match Linear fan_in"
    N1p = w1p.shape[1]
    N2p = w2p.shape[1]

    # Batch tile selection + VMEM budget (v7x has only 64 MiB physical VMEM).
    TILE_B = _pick_tile_b(B, tile_b)
    budget = 40 * 1024 * 1024
    while TILE_B > 128 and _vmem_footprint(TILE_B, K1, N1p, N2p) > budget:
        TILE_B = max(128, TILE_B // 2)
    Bp = _round_up(B, TILE_B)
    n_tiles = Bp // TILE_B

    # Only pad the batch dim, and only when needed (no feature-dim pad, no cast).
    xp = x if Bp == B else jnp.pad(x, ((0, Bp - B), (0, 0)))

    vmem_limit = int(min(112 * 1024 * 1024,
                         max(32 * 1024 * 1024,
                             _vmem_footprint(TILE_B, K1, N1p, N2p) * 5 // 4)))

    cost = pl.CostEstimate(
        flops=2 * Bp * (K1 * N1p + N1p * N2p + N2p),
        transcendentals=0,
        bytes_accessed=(xp.size * xp.dtype.itemsize            # x streamed once
                        + (w1p.size + w2p.size) * 2            # bf16 weights
                        + (b1p.size + b2p.size + w3p.size + b3s.size) * 4
                        + Bp * 4),                              # output row
    )

    out = pl.pallas_call(
        _discriminator_kernel,
        out_shape=jax.ShapeDtypeStruct((1, Bp), jnp.float32),
        grid=(n_tiles,),
        in_specs=[
            pl.BlockSpec((TILE_B, K1), lambda i: (i, 0)),            # x: streamed over batch
            _resident_spec((K1, N1p), single_buffer_weights),         # w1: resident
            _resident_spec((1, N1p), single_buffer_weights),          # b1
            _resident_spec((N1p, N2p), single_buffer_weights),        # w2
            _resident_spec((1, N2p), single_buffer_weights),          # b2
            _resident_spec((1, N2p), single_buffer_weights),          # w3 row
            pl.BlockSpec(memory_space=pltpu.MemorySpace.SMEM),        # b3 scalar
        ],
        out_specs=pl.BlockSpec((1, TILE_B), lambda i: (0, i)),        # lane-dense output row
        compiler_params=pltpu.CompilerParams(
            dimension_semantics=("parallel",),
            vmem_limit_bytes=vmem_limit,
        ),
        cost_estimate=cost,
    )(xp, w1p, b1p, w2p, b2p, w3p, b3s)

    # PyTorch .squeeze(): (B, 1) -> (B,); for B == 1 this yields a 0-d scalar.
    return jnp.squeeze(out[0, :B])


def discriminator_forward(x, prepared, *, tile_b=512):
    """x: (B, image_size) f32. prepared: output of prepare_params. Returns (B,) f32."""
    try:
        return _forward_impl(x, prepared, tile_b=tile_b, single_buffer_weights=True)
    except Exception:
        # pipeline_mode=pl.Buffered(1) unsupported in this jax build: fall back
        # to default (double-buffered) resident weights — same semantics.
        return _forward_impl(x, prepared, tile_b=tile_b, single_buffer_weights=False)


def init_params(key, image_size, hidden_dim):
    """Deterministic init mimicking nn.Linear default (U(-1/sqrt(fan_in), 1/sqrt(fan_in)))."""
    def linear_init(k, fan_in, fan_out):
        kw, kb = jax.random.split(k)
        bound = 1.0 / jnp.sqrt(jnp.float32(fan_in))
        w = jax.random.uniform(kw, (fan_in, fan_out), jnp.float32, -bound, bound)
        b = jax.random.uniform(kb, (1, fan_out), jnp.float32, -bound, bound)
        return w, b

    k1, k2, k3 = jax.random.split(key, 3)
    w1, b1 = linear_init(k1, image_size, hidden_dim * 2)
    w2, b2 = linear_init(k2, hidden_dim * 2, hidden_dim)
    w3, b3 = linear_init(k3, hidden_dim, 1)
    return {"w1": w1, "b1": b1, "w2": w2, "b2": b2, "w3": w3, "b3": b3}


def _reference_forward(x, params):
    h1 = x @ params["w1"] + params["b1"]
    h1 = jnp.where(h1 > 0, h1, 0.2 * h1)
    h2 = h1 @ params["w2"] + params["b2"]
    h2 = jnp.where(h2 > 0, h2, 0.2 * h2)
    out = h2 @ params["w3"] + params["b3"]
    return jnp.squeeze(out, axis=-1)


if __name__ == "__main__":
    image_size = 64   # flattened image dimension
    hidden_dim = 32
    batch = 8

    key = jax.random.PRNGKey(0)
    kx, kp = jax.random.split(key)
    x = jax.random.normal(kx, (batch, image_size), jnp.float32)
    params = init_params(kp, image_size, hidden_dim)

    # Weight padding/cast happens exactly once, outside the per-call jit.
    prepared = prepare_params(params)
    jax.block_until_ready(prepared)

    y = discriminator_forward(x, prepared)
    jax.block_until_ready(y)

    # Sanity check against plain-JAX f32 reference (kernel uses bf16 MXU inputs,
    # so allow ~1e-2-level differences).
    y_ref = _reference_forward(x, params)
    assert y.shape == (batch,)
    assert jnp.allclose(y, y_ref, atol=5e-2, rtol=5e-2), (y, y_ref)

    print("KERNEL_OK")
</pallas_src>

<mosaic_0001>
module attributes {stable_mosaic.version = 11 : i64} {
  func.func @_discriminator_kernel(%arg0: i32, %arg1: memref<8x64xf32, #tpu.memory_space<vmem>>, %arg2: memref<64x128xbf16, #tpu.memory_space<vmem>>, %arg3: memref<1x128xf32, #tpu.memory_space<vmem>>, %arg4: memref<128x128xbf16, #tpu.memory_space<vmem>>, %arg5: memref<1x128xf32, #tpu.memory_space<vmem>>, %arg6: memref<1x128xf32, #tpu.memory_space<vmem>>, %arg7: memref<1x1xf32, #tpu.memory_space<smem>>, %arg8: memref<1x8xf32, #tpu.memory_space<vmem>>) attributes {dimension_semantics = [#tpu.dimension_semantics<parallel>], iteration_bounds = array<i64: 1>, scalar_prefetch = 0 : i64, scratch_operands = 0 : i64, tpu.core_type = #tpu.core_type<tc>, window_params = [{transform_indices = @transform_0, window_bounds = array<i64: 8, 64>}, {pipeline_mode = #tpu.pipeline_mode<synchronous>, transform_indices = @transform_1, window_bounds = array<i64: 64, 128>}, {pipeline_mode = #tpu.pipeline_mode<synchronous>, transform_indices = @transform_2, window_bounds = array<i64: 1, 128>}, {pipeline_mode = #tpu.pipeline_mode<synchronous>, transform_indices = @transform_3, window_bounds = array<i64: 128, 128>}, {pipeline_mode = #tpu.pipeline_mode<synchronous>, transform_indices = @transform_4, window_bounds = array<i64: 1, 128>}, {pipeline_mode = #tpu.pipeline_mode<synchronous>, transform_indices = @transform_5, window_bounds = array<i64: 1, 128>}, {transform_indices = @transform_6, window_bounds = array<i64: 1, 1>}, {transform_indices = @transform_7, window_bounds = array<i64: 1, 8>}]} {
    %c0 = arith.constant 0 : index
    %c0_0 = arith.constant 0 : index
    %0 = vector.load %arg1[%c0, %c0_0] : memref<8x64xf32, #tpu.memory_space<vmem>>, vector<8x64xf32>
    %1 = arith.truncf %0 : vector<8x64xf32> to vector<8x64xbf16>
    %c0_1 = arith.constant 0 : index
    %c0_2 = arith.constant 0 : index
    %2 = vector.load %arg2[%c0_1, %c0_2] : memref<64x128xbf16, #tpu.memory_space<vmem>>, vector<64x128xbf16>
    %cst = arith.constant dense<0.000000e+00> : vector<8x128xf32>
    %3 = tpu.matmul %1, %2, %cst {dimension_numbers = #tpu.dot_dimension_numbers<[1], [0], [0], [1], [0, 0, 1, 1], [], []>} : vector<8x64xbf16>, vector<64x128xbf16>, vector<8x128xf32> -> vector<8x128xf32>
    %c0_3 = arith.constant 0 : index
    %c0_4 = arith.constant 0 : index
    %4 = vector.load %arg3[%c0_3, %c0_4] : memref<1x128xf32, #tpu.memory_space<vmem>>, vector<1x128xf32>
    %5 = vector.broadcast %4 : vector<1x128xf32> to vector<8x128xf32>
    %6 = arith.addf %3, %5 : vector<8x128xf32>
    %cst_5 = arith.constant 2.000000e-01 : f32
    %7 = vector.broadcast %cst_5 : f32 to vector<8x128xf32>
    %8 = arith.mulf %7, %6 : vector<8x128xf32>
    %9 = arith.maximumf %6, %8 : vector<8x128xf32>
    %10 = arith.truncf %9 : vector<8x128xf32> to vector<8x128xbf16>
    %c0_6 = arith.constant 0 : index
    %c0_7 = arith.constant 0 : index
    %11 = vector.load %arg4[%c0_6, %c0_7] : memref<128x128xbf16, #tpu.memory_space<vmem>>, vector<128x128xbf16>
    %cst_8 = arith.constant dense<0.000000e+00> : vector<8x128xf32>
    %12 = tpu.matmul %10, %11, %cst_8 {dimension_numbers = #tpu.dot_dimension_numbers<[1], [0], [0], [1], [0, 0, 1, 1], [], []>} : vector<8x128xbf16>, vector<128x128xbf16>, vector<8x128xf32> -> vector<8x128xf32>
    %c0_9 = arith.constant 0 : index
    %c0_10 = arith.constant 0 : index
    %13 = vector.load %arg5[%c0_9, %c0_10] : memref<1x128xf32, #tpu.memory_space<vmem>>, vector<1x128xf32>
    %14 = vector.broadcast %13 : vector<1x128xf32> to vector<8x128xf32>
    %15 = arith.addf %12, %14 : vector<8x128xf32>
    %cst_11 = arith.constant 2.000000e-01 : f32
    %16 = vector.broadcast %cst_11 : f32 to vector<8x128xf32>
    %17 = arith.mulf %16, %15 : vector<8x128xf32>
    %18 = arith.maximumf %15, %17 : vector<8x128xf32>
    %c0_12 = arith.constant 0 : index
    %c0_13 = arith.constant 0 : index
    %19 = vector.load %arg6[%c0_12, %c0_13] : memref<1x128xf32, #tpu.memory_space<vmem>>, vector<1x128xf32>
    %20 = vector.broadcast %19 : vector<1x128xf32> to vector<8x128xf32>
    %21 = arith.mulf %18, %20 : vector<8x128xf32>
    %cst_14 = arith.constant dense<0.000000e+00> : vector<8xf32>
    %22 = vector.multi_reduction <add>, %21, %cst_14 [1] : vector<8x128xf32> to vector<8xf32>
    %23 = vector.shape_cast %22 : vector<8xf32> to vector<8x1xf32>
    %c0_15 = arith.constant 0 : index
    %c0_16 = arith.constant 0 : index
    %24 = memref.load %arg7[%c0_15, %c0_16] : memref<1x1xf32, #tpu.memory_space<smem>>
    %25 = vector.broadcast %24 : f32 to vector<8x1xf32>
    %26 = arith.addf %23, %25 : vector<8x1xf32>
    %27 = tpu.transpose %26, [1, 0] : vector<8x1xf32> -> vector<1x8xf32>
    %c0_17 = arith.constant 0 : index
    %c0_18 = arith.constant 0 : index
    %28 = vector.load %arg8[%c0_17, %c0_18] : memref<1x8xf32, #tpu.memory_space<vmem>>, vector<1x8xf32>
    tpu.vector_store %arg8[%c0_17, %c0_18], %27 {strides = array<i32>} : memref<1x8xf32, #tpu.memory_space<vmem>>, vector<1x8xf32>,
    return
  }
  func.func @transform_0(%arg0: i32) -> (i32, i32) {
    %c0_i32 = arith.constant 0 : i32
    %c0_i32_0 = arith.constant 0 : i32
    return %arg0, %c0_i32 : i32, i32
  }
  func.func @transform_1(%arg0: i32) -> (i32, i32) {
    %c0_i32 = arith.constant 0 : i32
    %c0_i32_0 = arith.constant 0 : i32
    %c0_i32_1 = arith.constant 0 : i32
    return %c0_i32, %c0_i32_0 : i32, i32
  }
  func.func @transform_2(%arg0: i32) -> (i32, i32) {
    %c0_i32 = arith.constant 0 : i32
    %c0_i32_0 = arith.constant 0 : i32
    %c0_i32_1 = arith.constant 0 : i32
    return %c0_i32, %c0_i32_0 : i32, i32
  }
  func.func @transform_3(%arg0: i32) -> (i32, i32) {
    %c0_i32 = arith.constant 0 : i32
    %c0_i32_0 = arith.constant 0 : i32
    %c0_i32_1 = arith.constant 0 : i32
    return %c0_i32, %c0_i32_0 : i32, i32
  }
  func.func @transform_4(%arg0: i32) -> (i32, i32) {
    %c0_i32 = arith.constant 0 : i32
    %c0_i32_0 = arith.constant 0 : i32
    %c0_i32_1 = arith.constant 0 : i32
    return %c0_i32, %c0_i32_0 : i32, i32
  }
  func.func @transform_5(%arg0: i32) -> (i32, i32) {
    %c0_i32 = arith.constant 0 : i32
    %c0_i32_0 = arith.constant 0 : i32
    %c0_i32_1 = arith.constant 0 : i32
    return %c0_i32, %c0_i32_0 : i32, i32
  }
  func.func @transform_6(%arg0: i32) -> (i32, i32) {
    %c0_i32 = arith.constant 0 : i32
    %c0_i32_0 = arith.constant 0 : i32
    %c0_i32_1 = arith.constant 0 : i32
    return %c0_i32, %c0_i32_0 : i32, i32
  }
  func.func @transform_7(%arg0: i32) -> (i32, i32) {
    %c0_i32 = arith.constant 0 : i32
    %c0_i32_0 = arith.constant 0 : i32
    return %c0_i32, %arg0 : i32, i32
  }
}

module attributes {stable_mosaic.version = 11 : i64} {
  func.func @_discriminator_kernel(%arg0: i32, %arg1: memref<8x64xf32, #tpu.memory_space<vmem>>, %arg2: memref<64x128xbf16, #tpu.memory_space<vmem>>, %arg3: memref<1x128xf32, #tpu.memory_space<vmem>>, %arg4: memref<128x128xbf16, #tpu.memory_space<vmem>>, %arg5: memref<1x128xf32, #tpu.memory_space<vmem>>, %arg6: memref<1x128xf32, #tpu.memory_space<vmem>>, %arg7: memref<1x1xf32, #tpu.memory_space<smem>>, %arg8: memref<1x8xf32, #tpu.memory_space<vmem>>) attributes {dimension_semantics = [#tpu.dimension_semantics<parallel>], iteration_bounds = array<i64: 1>, scalar_prefetch = 0 : i64, scratch_operands = 0 : i64, tpu.core_type = #tpu.core_type<tc>, window_params = [{transform_indices = @transform_0, window_bounds = array<i64: 8, 64>}, {pipeline_mode = #tpu.pipeline_mode<synchronous>, transform_indices = @transform_1, window_bounds = array<i64: 64, 128>}, {pipeline_mode = #tpu.pipeline_mode<synchronous>, transform_indices = @transform_2, window_bounds = array<i64: 1, 128>}, {pipeline_mode = #tpu.pipeline_mode<synchronous>, transform_indices = @transform_3, window_bounds = array<i64: 128, 128>}, {pipeline_mode = #tpu.pipeline_mode<synchronous>, transform_indices = @transform_4, window_bounds = array<i64: 1, 128>}, {pipeline_mode = #tpu.pipeline_mode<synchronous>, transform_indices = @transform_5, window_bounds = array<i64: 1, 128>}, {transform_indices = @transform_6, window_bounds = array<i64: 1, 1>}, {transform_indices = @transform_7, window_bounds = array<i64: 1, 8>}]} {
    %c0 = arith.constant 0 : index
    %c0_0 = arith.constant 0 : index
    %0 = vector.load %arg1[%c0, %c0_0] : memref<8x64xf32, #tpu.memory_space<vmem>>, vector<8x64xf32>
    %1 = arith.truncf %0 : vector<8x64xf32> to vector<8x64xbf16>
    %c0_1 = arith.constant 0 : index
    %c0_2 = arith.constant 0 : index
    %2 = vector.load %arg2[%c0_1, %c0_2] : memref<64x128xbf16, #tpu.memory_space<vmem>>, vector<64x128xbf16>
    %cst = arith.constant dense<0.000000e+00> : vector<8x128xf32>
    %3 = tpu.matmul %1, %2, %cst {dimension_numbers = #tpu.dot_dimension_numbers<[1], [0], [0], [1], [0, 0, 1, 1], [], []>} : vector<8x64xbf16>, vector<64x128xbf16>, vector<8x128xf32> -> vector<8x128xf32>
    %c0_3 = arith.constant 0 : index
    %c0_4 = arith.constant 0 : index
    %4 = vector.load %arg3[%c0_3, %c0_4] : memref<1x128xf32, #tpu.memory_space<vmem>>, vector<1x128xf32>
    %5 = vector.broadcast %4 : vector<1x128xf32> to vector<8x128xf32>
    %6 = arith.addf %3, %5 : vector<8x128xf32>
    %cst_5 = arith.constant 2.000000e-01 : f32
    %7 = vector.broadcast %cst_5 : f32 to vector<8x128xf32>
    %8 = arith.mulf %7, %6 : vector<8x128xf32>
    %9 = arith.maximumf %6, %8 : vector<8x128xf32>
    %10 = arith.truncf %9 : vector<8x128xf32> to vector<8x128xbf16>
    %c0_6 = arith.constant 0 : index
    %c0_7 = arith.constant 0 : index
    %11 = vector.load %arg4[%c0_6, %c0_7] : memref<128x128xbf16, #tpu.memory_space<vmem>>, vector<128x128xbf16>
    %cst_8 = arith.constant dense<0.000000e+00> : vector<8x128xf32>
    %12 = tpu.matmul %10, %11, %cst_8 {dimension_numbers = #tpu.dot_dimension_numbers<[1], [0], [0], [1], [0, 0, 1, 1], [], []>} : vector<8x128xbf16>, vector<128x128xbf16>, vector<8x128xf32> -> vector<8x128xf32>
    %c0_9 = arith.constant 0 : index
    %c0_10 = arith.constant 0 : index
    %13 = vector.load %arg5[%c0_9, %c0_10] : memref<1x128xf32, #tpu.memory_space<vmem>>, vector<1x128xf32>
    %14 = vector.broadcast %13 : vector<1x128xf32> to vector<8x128xf32>
    %15 = arith.addf %12, %14 : vector<8x128xf32>
    %cst_11 = arith.constant 2.000000e-01 : f32
    %16 = vector.broadcast %cst_11 : f32 to vector<8x128xf32>
    %17 = arith.mulf %16, %15 : vector<8x128xf32>
    %18 = arith.maximumf %15, %17 : vector<8x128xf32>
    %c0_12 = arith.constant 0 : index
    %c0_13 = arith.constant 0 : index
    %19 = vector.load %arg6[%c0_12, %c0_13] : memref<1x128xf32, #tpu.memory_space<vmem>>, vector<1x128xf32>
    %20 = vector.broadcast %19 : vector<1x128xf32> to vector<8x128xf32>
    %21 = arith.mulf %18, %20 : vector<8x128xf32>
    %cst_14 = arith.constant dense<0.000000e+00> : vector<8xf32>
    %22 = vector.multi_reduction <add>, %21, %cst_14 [1] : vector<8x128xf32> to vector<8xf32>
    %23 = vector.shape_cast %22 : vector<8xf32> to vector<8x1xf32>
    %c0_15 = arith.constant 0 : index
    %c0_16 = arith.constant 0 : index
    %24 = memref.load %arg7[%c0_15, %c0_16] : memref<1x1xf32, #tpu.memory_space<smem>>
    %25 = vector.broadcast %24 : f32 to vector<8x1xf32>
    %26 = arith.addf %23, %25 : vector<8x1xf32>
    %27 = tpu.transpose %26, [1, 0] : vector<8x1xf32> -> vector<1x8xf32>
    %c0_17 = arith.constant 0 : index
    %c0_18 = arith.constant 0 : index
    %28 = vector.load %arg8[%c0_17, %c0_18] : memref<1x8xf32, #tpu.memory_space<vmem>>, vector<1x8xf32>
    tpu.vector_store %arg8[%c0_17, %c0_18], %27 {strides = array<i32>} : memref<1x8xf32, #tpu.memory_space<vmem>>, vector<1x8xf32>,
    return
  }
  func.func @transform_0(%arg0: i32) -> (i32, i32) {
    %c0_i32 = arith.constant 0 : i32
    %c0_i32_0 = arith.constant 0 : i32
    return %arg0, %c0_i32 : i32, i32
  }
  func.func @transform_1(%arg0: i32) -> (i32, i32) {
    %c0_i32 = arith.constant 0 : i32
    %c0_i32_0 = arith.constant 0 : i32
    %c0_i32_1 = arith.constant 0 : i32
    return %c0_i32, %c0_i32_0 : i32, i32
  }
  func.func @transform_2(%arg0: i32) -> (i32, i32) {
    %c0_i32 = arith.constant 0 : i32
    %c0_i32_0 = arith.constant 0 : i32
    %c0_i32_1 = arith.constant 0 : i32
    return %c0_i32, %c0_i32_0 : i32, i32
  }
  func.func @transform_3(%arg0: i32) -> (i32, i32) {
    %c0_i32 = arith.constant 0 : i32
    %c0_i32_0 = arith.constant 0 : i32
    %c0_i32_1 = arith.constant 0 : i32
    return %c0_i32, %c0_i32_0 : i32, i32
  }
  func.func @transform_4(%arg0: i32) -> (i32, i32) {
    %c0_i32 = arith.constant 0 : i32
    %c0_i32_0 = arith.constant 0 : i32
    %c0_i32_1 = arith.constant 0 : i32
    return %c0_i32, %c0_i32_0 : i32, i32
  }
  func.func @transform_5(%arg0: i32) -> (i32, i32) {
    %c0_i32 = arith.constant 0 : i32
    %c0_i32_0 = arith.constant 0 : i32
    %c0_i32_1 = arith.constant 0 : i32
    return %c0_i32, %c0_i32_0 : i32, i32
  }
  func.func @transform_6(%arg0: i32) -> (i32, i32) {
    %c0_i32 = arith.constant 0 : i32
    %c0_i32_0 = arith.constant 0 : i32
    %c0_i32_1 = arith.constant 0 : i32
    return %c0_i32, %c0_i32_0 : i32, i32
  }
  func.func @transform_7(%arg0: i32) -> (i32, i32) {
    %c0_i32 = arith.constant 0 : i32
    %c0_i32_0 = arith.constant 0 : i32
    return %c0_i32, %arg0 : i32, i32
  }
}

</mosaic_0001>

<bundles_post_ra>
// kernel: _forward_impl.1
= control target key start
LH: loop header
LB: loop body
LE: loop exit
PB: predicated region body
PF: predicated region fallthrough
CT: control target
= control target key end

     0   :  { %13 = vsyncpa [#allocation4], 0  ;;  %s622_s0 = inlined_call_operand.hbm [shape: f32[8,64], index: 0, kind: input, shape index: {}]   ;;  %s623_s1 = inlined_call_operand.hbm [shape: bf16[64,128], index: 1, kind: input, shape index: {}]   ;;  %s624_s2 = inlined_call_operand.vmem [shape: f32[1,128], index: 2, kind: input, shape index: {}]   ;;  %s625_s3 = inlined_call_operand.hbm [shape: bf16[128,128], index: 3, kind: input, shape index: {}]   ;;  %s626_s4 = inlined_call_operand.vmem [shape: f32[1,128], index: 4, kind: input, shape index: {}]   ;;  %s627_s5 = inlined_call_operand.vmem [shape: f32[1,128], index: 5, kind: input, shape index: {}]   ;;  %s628_s6 = inlined_call_operand.<no memory space> [shape: f32[1,1], index: 6, kind: input, shape index: {}]   ;;  %s629_s7 = inlined_call_operand.hbm [shape: f32[1,8], index: 7, kind: output, shape index: {}]  }
   0x1   :  { %14 = vsyncpa [#allocation7], 0 }
   0x2   :  { %15 = vsyncpa [#allocation5], 0  ;;  %s508_s24 = smov [#allocation6]   ;;  %s414_s28 = scalar_lea.hbm %s623_s1, 512 }
   0x3   :  { %s31_s25 = sshll.u32 %s508_s24, 4  ;;  %p415_p0 = scmp.ne.s32.totalorder %s623_s1, %s414_s28  ;;  %s32_s25 = int_to_ptr.vmem [resolvable:$true] %s31_s25 }
   0x4   :  { %p418_p1 = scmp.lt.u32.totalorder %s414_s28, %s623_s1 }
   0x6   :  { %p420_p2 = pnand %p418_p1, %p415_p0 }
   0x8   :  { %423 = shalt.err (!%p420_p2)
}
   0x9   :  { %s424_s10 = scalar_lea.vmem %s32_s25, 512  ;;  %p429_p4 = scmp.lt.s32.totalorder %s32_s25, %s32_s25 }
   0xa   :  { %p425_p3 = scmp.ne.s32.totalorder %s32_s25, %s424_s10  ;;  %p430_p5 = scmp.lt.s32.totalorder %s424_s10, %s424_s10 }
   0xc   :  { %p431_p6 = por %p430_p5, %p429_p4 }
   0xe   :  { %p432_p7 = pnand %p431_p6, %p425_p3 }
  0x10   :  { %435 = shalt.err (!%p432_p7)
}
  0x11   :  { %s509_s11 = smov 64   ;;  %s510_s12 = smov 4  }
  0x12   :  { %37 = dma.hbm_to_vmem [thread:$0]  %s623_s1, 512, %s32_s25, [#allocation7], %s509_s11, %s509_s11, %s510_s12  }
  0x13   :  { %s511_s15 = smov [#allocation3]   ;;  %s512_s17 = smov [#allocation8]  }
  0x14   :  { %s22_s16 = sshll.u32 %s511_s15, 4  ;;  %s45_s18 = sshll.u32 %s512_s17, 4  ;;  %s23_s16 = int_to_ptr.vmem [resolvable:$true] %s22_s16  ;;  %s46_s18 = int_to_ptr.vmem [resolvable:$true] %s45_s18 }
  0x15   :  { %s436_s21 = scalar_lea.hbm %s622_s0, 128 }
  0x16   :  { %p437_p8 = scmp.ne.s32.totalorder %s622_s0, %s436_s21  ;;  %p440_p9 = scmp.lt.u32.totalorder %s436_s21, %s622_s0 }
  0x18   :  { %p442_p10 = pnand %p440_p9, %p437_p8 }
  0x1a   :  { %445 = shalt.err (!%p442_p10)
}
  0x1b   :  { %s446_s1 = scalar_lea.vmem %s23_s16, 128  ;;  %p451_p12 = scmp.lt.s32.totalorder %s23_s16, %s23_s16 }
  0x1c   :  { %p447_p11 = scmp.ne.s32.totalorder %s23_s16, %s446_s1  ;;  %p452_p13 = scmp.lt.s32.totalorder %s446_s1, %s446_s1 }
  0x1e   :  { %p453_p0 = por %p452_p13, %p451_p12 }
  0x20   :  { %p454_p1 = pnand %p453_p0, %p447_p11 }
  0x22   :  { %457 = shalt.err (!%p454_p1)
}
  0x23   :  { %25 = dma.hbm_to_vmem [thread:$0]  %s622_s0, 128, %s23_s16, [#allocation4]  }
  0x24   :  { %s458_s30 = scalar_lea.hbm %s625_s3, 1024 }
  0x25   :  { %p459_p2 = scmp.ne.s32.totalorder %s625_s3, %s458_s30  ;;  %p462_p3 = scmp.lt.u32.totalorder %s458_s30, %s625_s3 }
  0x27   :  { %p464_p4 = pnand %p462_p3, %p459_p2 }
  0x29   :  { %467 = shalt.err (!%p464_p4)
}
  0x2a   :  { %s468_s14 = scalar_lea.vmem %s46_s18, 1024  ;;  %p473_p6 = scmp.lt.s32.totalorder %s46_s18, %s46_s18 }
  0x2b   :  { %p469_p5 = scmp.ne.s32.totalorder %s46_s18, %s468_s14  ;;  %p474_p7 = scmp.lt.s32.totalorder %s468_s14, %s468_s14 }
  0x2d   :  { %p475_p8 = por %p474_p7, %p473_p6 }
  0x2f   :  { %p476_p9 = pnand %p475_p8, %p469_p5 }
  0x31   :  { %479 = shalt.err (!%p476_p9)
}
  0x32   :  { %51 = dma.hbm_to_vmem [thread:$0]  %s625_s3, 1024, %s46_s18, [#allocation7], %s509_s11, %s509_s11, %s510_s12  }
  0x33   :  { %502 = dma.done.wait [#allocation4], 128  }
  0x34   :  { %503 = vsyncadd [#allocation4], 4294967168 }
  0x35   :  { %504 = dma.done.wait [#allocation7], 1536  }
  0x36   :  { %505 = vsyncadd [#allocation7], 4294965760  ;;  %v513_v0 = vmov 0.0   ;;  %vm514_vm0 = vmmov 0   ;;  %v402_v1 = vld [vmem:[#allocation6] sm:$0xff]   ;;  %v403_v2 = vld [vmem:[#allocation6 + $0x8] sm:$0xff]   ;;  %v280_v34 = vstv %s628_s6 }
  0x37   :  { %362 = vmatprep.subr.bf16.mxu0 %v513_v0  ;;  %370 = vmatprep.mubr.msk.bf16.mxu0 %vm514_vm0, %v513_v0  ;;  %v406_v3 = vld [vmem:[#allocation8] sm:$0xff]   ;;  %v404_v4 = vld [vmem:[#allocation6 + $0x10] sm:$0xff]   ;;  %v407_v5 = vld [vmem:[#allocation8 + $0x8] sm:$0xff]   ;;  %vm109_vm1 = vcmask 523264   ;;  %vm314_vm2 = vcmask 57344  }
  0x38   :  { %374 = vmatprep.subr.bf16.mxu1 %v513_v0  ;;  %390 = vmatprep.mubr.msk.bf16.mxu1 %vm514_vm0, %v513_v0  ;;  %v405_v6 = vld [vmem:[#allocation6 + $0x18] sm:$0xff]   ;;  %v408_v8 = vld [vmem:[#allocation8 + $0x10] sm:$0xff]   ;;  %v410_v11 = vld [vmem:[#allocation8 + $0x20] sm:$0xff]  }
  0x39   :  { %363 = vmatpush3.bf16.msra.mxu0 %v402_v1  ;;  %375 = vmatpush3.bf16.msra.mxu1 %v406_v3  ;;  %v68_v7 = vld [vmem:[#allocation3] sm:$0xff]  ;;  %v411_v12 = vld [vmem:[#allocation8 + $0x28] sm:$0xff]   ;;  %v412_v13 = vld [vmem:[#allocation8 + $0x30] sm:$0xff]  }
  0x3a   :  { %364 = vmatprep.subr.bf16.mxu0 %v513_v0  ;;  %376 = vmatprep.subr.bf16.mxu1 %v513_v0  ;;  %v69_v9 = vpack.c.bf16 %v68_v7, %v68_v7  ;;  %v409_v10 = vld [vmem:[#allocation8 + $0x18] sm:$0xff]  }
  0x3b   :  { %v413_v14 = vld [vmem:[#allocation8 + $0x38] sm:$0xff]  }
  0x3c   :  { %v332_v15 = vld [vmem:[%s624_s2] ss:$0 sm:$0xff] }
  0x3d   :  { %365 = vmatpush3.bf16.msra.mxu0 %v403_v2  ;;  %377 = vmatpush3.bf16.msra.mxu1 %v407_v5  ;;  %v338_v24 = vld [vmem:[%s626_s4] ss:$0 sm:$0xff]  ;;  %s515_s4 = smov [#allocation9]  }
  0x3e   :  { %366 = vmatprep.subr.bf16.mxu0 %v513_v0  ;;  %378 = vmatprep.subr.bf16.mxu1 %v513_v0  ;;  %v347_v31 = vld [vmem:[%s627_s5] ss:$0 sm:$0xff]  ;;  %s322_s20 = sshll.u32 %s515_s4, 4  ;;  %s323_s20 = int_to_ptr.vmem [resolvable:$true] %s322_s20 }
  0x3f   :  { %s480_s21 = scalar_lea.vmem %s323_s20, 16  ;;  %s484_s22 = scalar_lea.vmem %s323_s20, 32 }
  0x40   :  { %p481_p10 = scmp.ne.s32.totalorder %s323_s20, %s480_s21  ;;  %p485_p11 = scmp.lt.s32.totalorder %s323_s20, %s323_s20 }
  0x41   :  { %367 = vmatpush3.bf16.msra.mxu0 %v404_v4  ;;  %379 = vmatpush3.bf16.msra.mxu1 %v408_v8  ;;  %p486_p12 = scmp.lt.s32.totalorder %s484_s22, %s480_s21 }
  0x42   :  { %368 = vmatprep.subr.bf16.mxu0 %v513_v0  ;;  %380 = vmatprep.subr.bf16.mxu1 %v513_v0 }
  0x43   :  { %p487_p13 = por %p486_p12, %p485_p11 }
  0x45   :  { %369 = vmatpush3.bf16.msra.mxu0 %v405_v6  ;;  %381 = vmatpush3.bf16.msra.mxu1 %v409_v10  ;;  %p488_p0 = pnand %p487_p13, %p481_p10 }
  0x46   :  { %382 = vmatprep.subr.bf16.mxu1 %v513_v0 }
  0x48   :  { %371 = vmatmul.mubr.msk.bf16.vlgmr.msra.gmra.mrb[0].mxu0 %vm109_vm1, %v69_v9 }
  0x49   :  { %383 = vmatpush3.bf16.msra.mxu1 %v410_v11 }
  0x4a   :  { %384 = vmatprep.subr.bf16.mxu1 %v513_v0 }
  0x4d   :  { %385 = vmatpush3.bf16.msra.mxu1 %v411_v12 }
  0x4e   :  { %386 = vmatprep.subr.bf16.mxu1 %v513_v0 }
  0x51   :  { %387 = vmatpush3.bf16.msra.mxu1 %v412_v13 }
  0x52   :  { %388 = vmatprep.subr.bf16.mxu1 %v513_v0 }
  0x55   :  { %389 = vmatpush3.bf16.msra.mxu1 %v413_v14 }
 0x11b   :  { %v147_v16 = vpop.f32.mrb[0].mxu0 }
 0x11c   :  { %v148_v17 = vadd.f32 %v332_v15, %v147_v16  ;;  %v372_v18 = vpop.f32.mrb[1].mxu0 }
 0x11d   :  { %v150_v19 = vpop.f32.mrb[2].mxu0 }
 0x11e   :  { %v153_v20 = vmul.f32 0.2, %v148_v17  ;;  %v373_v21 = vpop.f32.mrb[3].mxu0 }
 0x120   :  { %v154_v22 = vmax.f32 %v148_v17, %v153_v20 }
 0x122   :  { %v155_v23 = vpack.c.bf16 %v154_v22, %v154_v22 }
 0x124   :  { %391 = vmatmul.mubr.bf16.vlgmr.msra.gmra.mrb[0].mxu1 %v155_v23 }
 0x1f7   :  { %v261_v25 = vpop.f32.mrb[0].mxu1 }
 0x1f8   :  { %v262_v26 = vadd.f32 %v338_v24, %v261_v25  ;;  %v392_v27 = vpop.f32.mrb[1].mxu1 }
 0x1f9   :  { %v264_v28 = vpop.f32.mrb[2].mxu1 }
 0x1fa   :  { %v267_v29 = vmul.f32 0.2, %v262_v26  ;;  %v393_v30 = vpop.f32.mrb[3].mxu1 }
 0x1fc   :  { %v268_v32 = vmax.f32 %v262_v26, %v267_v29 }
 0x1fe   :  { %v276_v33 = vmul.f32 %v347_v31, %v268_v32 }
 0x200   :  { %277 = vadd.xlane.f32.xlu0 %v276_v33 }
 0x28d   :  { %v278_v35 = vpop.xlane.xlu0 %277 }
 0x28e   :  { %v281_v36 = vadd.f32 %v280_v34, %v278_v35 }
 0x290   :  { %282 = vxpose.xlu0.b32.start.end [1/1] (short) (narrow) %v281_v36, 8 }
 0x310   :  { %v298_v37 = vpop.trf.xlu0 }
 0x311   :  { %315 = vst.msk [vmem:[#allocation9] sm:$0x1] %vm314_vm2, %v298_v37 }
 0x312   :  { %491 = shalt.err (!%p488_p0)
}
 0x313   :  { %s492_s6 = scalar_lea.hbm %s629_s7, 16 }
 0x314   :  { %p493_p1 = scmp.ne.s32.totalorder %s629_s7, %s492_s6  ;;  %p496_p2 = scmp.lt.u32.totalorder %s492_s6, %s629_s7 }
 0x316   :  { %p498_p3 = pnand %p496_p2, %p493_p1 }
 0x318   :  { %501 = shalt.err (!%p498_p3)
}
 0x319   :  { %325 = dma.vmem_to_hbm [thread:$0]  %s323_s20, 16, %s629_s7, [#allocation5]  }
 0x31a   :  { %506 = dma.done.wait [#allocation5], 16  }
 0x31b   :  { %507 = vsyncadd [#allocation5], 4294967280 }
 0x31c   :  { %329 = vsyncpa [#allocation4], 1 }
 0x31d   :  { %330 = vsyncpa [#allocation7], 1 }
 0x31e   :  { %331 = vsyncpa [#allocation5], 1 }

// kernel: _forward_impl.1
= control target key start
LH: loop header
LB: loop body
LE: loop exit
PB: predicated region body
PF: predicated region fallthrough
CT: control target
= control target key end

     0   :  { %13 = vsyncpa [#allocation4], 0  ;;  %s622_s0 = inlined_call_operand.hbm [shape: f32[8,64], index: 0, kind: input, shape index: {}]   ;;  %s623_s1 = inlined_call_operand.hbm [shape: bf16[64,128], index: 1, kind: input, shape index: {}]   ;;  %s624_s2 = inlined_call_operand.vmem [shape: f32[1,128], index: 2, kind: input, shape index: {}]   ;;  %s625_s3 = inlined_call_operand.hbm [shape: bf16[128,128], index: 3, kind: input, shape index: {}]   ;;  %s626_s4 = inlined_call_operand.vmem [shape: f32[1,128], index: 4, kind: input, shape index: {}]   ;;  %s627_s5 = inlined_call_operand.vmem [shape: f32[1,128], index: 5, kind: input, shape index: {}]   ;;  %s628_s6 = inlined_call_operand.<no memory space> [shape: f32[1,1], index: 6, kind: input, shape index: {}]   ;;  %s629_s7 = inlined_call_operand.hbm [shape: f32[1,8], index: 7, kind: output, shape index: {}]  }
   0x1   :  { %14 = vsyncpa [#allocation7], 0 }
   0x2   :  { %15 = vsyncpa [#allocation5], 0  ;;  %s508_s24 = smov [#allocation6]   ;;  %s414_s28 = scalar_lea.hbm %s623_s1, 512 }
   0x3   :  { %s31_s25 = sshll.u32 %s508_s24, 4  ;;  %p415_p0 = scmp.ne.s32.totalorder %s623_s1, %s414_s28  ;;  %s32_s25 = int_to_ptr.vmem [resolvable:$true] %s31_s25 }
   0x4   :  { %p418_p1 = scmp.lt.u32.totalorder %s414_s28, %s623_s1 }
   0x6   :  { %p420_p2 = pnand %p418_p1, %p415_p0 }
   0x8   :  { %423 = shalt.err (!%p420_p2)
}
   0x9   :  { %s424_s10 = scalar_lea.vmem %s32_s25, 512  ;;  %p429_p4 = scmp.lt.s32.totalorder %s32_s25, %s32_s25 }
   0xa   :  { %p425_p3 = scmp.ne.s32.totalorder %s32_s25, %s424_s10  ;;  %p430_p5 = scmp.lt.s32.totalorder %s424_s10, %s424_s10 }
   0xc   :  { %p431_p6 = por %p430_p5, %p429_p4 }
   0xe   :  { %p432_p7 = pnand %p431_p6, %p425_p3 }
  0x10   :  { %435 = shalt.err (!%p432_p7)
}
  0x11   :  { %s509_s11 = smov 64   ;;  %s510_s12 = smov 4  }
  0x12   :  { %37 = dma.hbm_to_vmem [thread:$0]  %s623_s1, 512, %s32_s25, [#allocation7], %s509_s11, %s509_s11, %s510_s12  }
  0x13   :  { %s511_s15 = smov [#allocation3]   ;;  %s512_s17 = smov [#allocation8]  }
  0x14   :  { %s22_s16 = sshll.u32 %s511_s15, 4  ;;  %s45_s18 = sshll.u32 %s512_s17, 4  ;;  %s23_s16 = int_to_ptr.vmem [resolvable:$true] %s22_s16  ;;  %s46_s18 = int_to_ptr.vmem [resolvable:$true] %s45_s18 }
  0x15   :  { %s436_s21 = scalar_lea.hbm %s622_s0, 128 }
  0x16   :  { %p437_p8 = scmp.ne.s32.totalorder %s622_s0, %s436_s21  ;;  %p440_p9 = scmp.lt.u32.totalorder %s436_s21, %s622_s0 }
  0x18   :  { %p442_p10 = pnand %p440_p9, %p437_p8 }
  0x1a   :  { %445 = shalt.err (!%p442_p10)
}
  0x1b   :  { %s446_s1 = scalar_lea.vmem %s23_s16, 128  ;;  %p451_p12 = scmp.lt.s32.totalorder %s23_s16, %s23_s16 }
  0x1c   :  { %p447_p11 = scmp.ne.s32.totalorder %s23_s16, %s446_s1  ;;  %p452_p13 = scmp.lt.s32.totalorder %s446_s1, %s446_s1 }
  0x1e   :  { %p453_p0 = por %p452_p13, %p451_p12 }
  0x20   :  { %p454_p1 = pnand %p453_p0, %p447_p11 }
  0x22   :  { %457 = shalt.err (!%p454_p1)
}
  0x23   :  { %25 = dma.hbm_to_vmem [thread:$0]  %s622_s0, 128, %s23_s16, [#allocation4]  }
  0x24   :  { %s458_s30 = scalar_lea.hbm %s625_s3, 1024 }
  0x25   :  { %p459_p2 = scmp.ne.s32.totalorder %s625_s3, %s458_s30  ;;  %p462_p3 = scmp.lt.u32.totalorder %s458_s30, %s625_s3 }
  0x27   :  { %p464_p4 = pnand %p462_p3, %p459_p2 }
  0x29   :  { %467 = shalt.err (!%p464_p4)
}
  0x2a   :  { %s468_s14 = scalar_lea.vmem %s46_s18, 1024  ;;  %p473_p6 = scmp.lt.s32.totalorder %s46_s18, %s46_s18 }
  0x2b   :  { %p469_p5 = scmp.ne.s32.totalorder %s46_s18, %s468_s14  ;;  %p474_p7 = scmp.lt.s32.totalorder %s468_s14, %s468_s14 }
  0x2d   :  { %p475_p8 = por %p474_p7, %p473_p6 }
  0x2f   :  { %p476_p9 = pnand %p475_p8, %p469_p5 }
  0x31   :  { %479 = shalt.err (!%p476_p9)
}
  0x32   :  { %51 = dma.hbm_to_vmem [thread:$0]  %s625_s3, 1024, %s46_s18, [#allocation7], %s509_s11, %s509_s11, %s510_s12  }
  0x33   :  { %502 = dma.done.wait [#allocation4], 128  }
  0x34   :  { %503 = vsyncadd [#allocation4], 4294967168 }
  0x35   :  { %504 = dma.done.wait [#allocation7], 1536  }
  0x36   :  { %505 = vsyncadd [#allocation7], 4294965760  ;;  %v513_v0 = vmov 0.0   ;;  %vm514_vm0 = vmmov 0   ;;  %v402_v1 = vld [vmem:[#allocation6] sm:$0xff]   ;;  %v403_v2 = vld [vmem:[#allocation6 + $0x8] sm:$0xff]   ;;  %v280_v34 = vstv %s628_s6 }
  0x37   :  { %362 = vmatprep.subr.bf16.mxu0 %v513_v0  ;;  %370 = vmatprep.mubr.msk.bf16.mxu0 %vm514_vm0, %v513_v0  ;;  %v406_v3 = vld [vmem:[#allocation8] sm:$0xff]   ;;  %v404_v4 = vld [vmem:[#allocation6 + $0x10] sm:$0xff]   ;;  %v407_v5 = vld [vmem:[#allocation8 + $0x8] sm:$0xff]   ;;  %vm109_vm1 = vcmask 523264   ;;  %vm314_vm2 = vcmask 57344  }
  0x38   :  { %374 = vmatprep.subr.bf16.mxu1 %v513_v0  ;;  %390 = vmatprep.mubr.msk.bf16.mxu1 %vm514_vm0, %v513_v0  ;;  %v405_v6 = vld [vmem:[#allocation6 + $0x18] sm:$0xff]   ;;  %v408_v8 = vld [vmem:[#allocation8 + $0x10] sm:$0xff]   ;;  %v410_v11 = vld [vmem:[#allocation8 + $0x20] sm:$0xff]  }
  0x39   :  { %363 = vmatpush3.bf16.msra.mxu0 %v402_v1  ;;  %375 = vmatpush3.bf16.msra.mxu1 %v406_v3  ;;  %v68_v7 = vld [vmem:[#allocation3] sm:$0xff]  ;;  %v411_v12 = vld [vmem:[#allocation8 + $0x28] sm:$0xff]   ;;  %v412_v13 = vld [vmem:[#allocation8 + $0x30] sm:$0xff]  }
  0x3a   :  { %364 = vmatprep.subr.bf16.mxu0 %v513_v0  ;;  %376 = vmatprep.subr.bf16.mxu1 %v513_v0  ;;  %v69_v9 = vpack.c.bf16 %v68_v7, %v68_v7  ;;  %v409_v10 = vld [vmem:[#allocation8 + $0x18] sm:$0xff]  }
  0x3b   :  { %v413_v14 = vld [vmem:[#allocation8 + $0x38] sm:$0xff]  }
  0x3c   :  { %v332_v15 = vld [vmem:[%s624_s2] ss:$0 sm:$0xff] }
  0x3d   :  { %365 = vmatpush3.bf16.msra.mxu0 %v403_v2  ;;  %377 = vmatpush3.bf16.msra.mxu1 %v407_v5  ;;  %v338_v24 = vld [vmem:[%s626_s4] ss:$0 sm:$0xff]  ;;  %s515_s4 = smov [#allocation9]  }
  0x3e   :  { %366 = vmatprep.subr.bf16.mxu0 %v513_v0  ;;  %378 = vmatprep.subr.bf16.mxu1 %v513_v0  ;;  %v347_v31 = vld [vmem:[%s627_s5] ss:$0 sm:$0xff]  ;;  %s322_s20 = sshll.u32 %s515_s4, 4  ;;  %s323_s20 = int_to_ptr.vmem [resolvable:$true] %s322_s20 }
  0x3f   :  { %s480_s21 = scalar_lea.vmem %s323_s20, 16  ;;  %s484_s22 = scalar_lea.vmem %s323_s20, 32 }
  0x40   :  { %p481_p10 = scmp.ne.s32.totalorder %s323_s20, %s480_s21  ;;  %p485_p11 = scmp.lt.s32.totalorder %s323_s20, %s323_s20 }
  0x41   :  { %367 = vmatpush3.bf16.msra.mxu0 %v404_v4  ;;  %379 = vmatpush3.bf16.msra.mxu1 %v408_v8  ;;  %p486_p12 = scmp.lt.s32.totalorder %s484_s22, %s480_s21 }
  0x42   :  { %368 = vmatprep.subr.bf16.mxu0 %v513_v0  ;;  %380 = vmatprep.subr.bf16.mxu1 %v513_v0 }
  0x43   :  { %p487_p13 = por %p486_p12, %p485_p11 }
  0x45   :  { %369 = vmatpush3.bf16.msra.mxu0 %v405_v6  ;;  %381 = vmatpush3.bf16.msra.mxu1 %v409_v10  ;;  %p488_p0 = pnand %p487_p13, %p481_p10 }
  0x46   :  { %382 = vmatprep.subr.bf16.mxu1 %v513_v0 }
  0x48   :  { %371 = vmatmul.mubr.msk.bf16.vlgmr.msra.gmra.mrb[0].mxu0 %vm109_vm1, %v69_v9 }
  0x49   :  { %383 = vmatpush3.bf16.msra.mxu1 %v410_v11 }
  0x4a   :  { %384 = vmatprep.subr.bf16.mxu1 %v513_v0 }
  0x4d   :  { %385 = vmatpush3.bf16.msra.mxu1 %v411_v12 }
  0x4e   :  { %386 = vmatprep.subr.bf16.mxu1 %v513_v0 }
  0x51   :  { %387 = vmatpush3.bf16.msra.mxu1 %v412_v13 }
  0x52   :  { %388 = vmatprep.subr.bf16.mxu1 %v513_v0 }
  0x55   :  { %389 = vmatpush3.bf16.msra.mxu1 %v413_v14 }
 0x11b   :  { %v147_v16 = vpop.f32.mrb[0].mxu0 }
 0x11c   :  { %v148_v17 = vadd.f32 %v332_v15, %v147_v16  ;;  %v372_v18 = vpop.f32.mrb[1].mxu0 }
 0x11d   :  { %v150_v19 = vpop.f32.mrb[2].mxu0 }
 0x11e   :  { %v153_v20 = vmul.f32 0.2, %v148_v17  ;;  %v373_v21 = vpop.f32.mrb[3].mxu0 }
 0x120   :  { %v154_v22 = vmax.f32 %v148_v17, %v153_v20 }
 0x122   :  { %v155_v23 = vpack.c.bf16 %v154_v22, %v154_v22 }
 0x124   :  { %391 = vmatmul.mubr.bf16.vlgmr.msra.gmra.mrb[0].mxu1 %v155_v23 }
 0x1f7   :  { %v261_v25 = vpop.f32.mrb[0].mxu1 }
 0x1f8   :  { %v262_v26 = vadd.f32 %v338_v24, %v261_v25  ;;  %v392_v27 = vpop.f32.mrb[1].mxu1 }
 0x1f9   :  { %v264_v28 = vpop.f32.mrb[2].mxu1 }
 0x1fa   :  { %v267_v29 = vmul.f32 0.2, %v262_v26  ;;  %v393_v30 = vpop.f32.mrb[3].mxu1 }
 0x1fc   :  { %v268_v32 = vmax.f32 %v262_v26, %v267_v29 }
 0x1fe   :  { %v276_v33 = vmul.f32 %v347_v31, %v268_v32 }
 0x200   :  { %277 = vadd.xlane.f32.xlu0 %v276_v33 }
 0x28d   :  { %v278_v35 = vpop.xlane.xlu0 %277 }
 0x28e   :  { %v281_v36 = vadd.f32 %v280_v34, %v278_v35 }
 0x290   :  { %282 = vxpose.xlu0.b32.start.end [1/1] (short) (narrow) %v281_v36, 8 }
 0x310   :  { %v298_v37 = vpop.trf.xlu0 }
 0x311   :  { %315 = vst.msk [vmem:[#allocation9] sm:$0x1] %vm314_vm2, %v298_v37 }
 0x312   :  { %491 = shalt.err (!%p488_p0)
}
 0x313   :  { %s492_s6 = scalar_lea.hbm %s629_s7, 16 }
 0x314   :  { %p493_p1 = scmp.ne.s32.totalorder %s629_s7, %s492_s6  ;;  %p496_p2 = scmp.lt.u32.totalorder %s492_s6, %s629_s7 }
 0x316   :  { %p498_p3 = pnand %p496_p2, %p493_p1 }
 0x318   :  { %501 = shalt.err (!%p498_p3)
}
 0x319   :  { %325 = dma.vmem_to_hbm [thread:$0]  %s323_s20, 16, %s629_s7, [#allocation5]  }
 0x31a   :  { %506 = dma.done.wait [#allocation5], 16  }
 0x31b   :  { %507 = vsyncadd [#allocation5], 4294967280 }
 0x31c   :  { %329 = vsyncpa [#allocation4], 1 }
 0x31d   :  { %330 = vsyncpa [#allocation7], 1 }
 0x31e   :  { %331 = vsyncpa [#allocation5], 1 }

</bundles_post_ra>
